<compile_context>
chip_gen: v7x
topology: tpu7x:2x2x1
jax: 0.10.0
libtpu: 0.0.40
codegen_flags: <defaults>
</compile_context>

<pallas_src>
import jax
import jax.numpy as jnp
from jax.experimental import pallas as pl
from jax.experimental.pallas import tpu as pltpu

LEAKY_SLOPE = 0.01
BN_EPS = 1e-5


def _leaky_relu(x):
    return jnp.where(x > 0, x, LEAKY_SLOPE * x)


def _dot_bf16(a, w_bf16):
    """MXU matmul: bf16 inputs, f32 accumulation."""
    return jnp.dot(a.astype(jnp.bfloat16), w_bf16,
                   preferred_element_type=jnp.float32)


def _bn_train_fused(x, gamma, beta):
    """Single-pass BatchNorm (batch stats, biased var), applied as x*s + t."""
    inv_n = 1.0 / x.shape[0]
    mean = jnp.sum(x, axis=0, keepdims=True) * inv_n
    mean_sq = jnp.sum(x * x, axis=0, keepdims=True) * inv_n
    var = mean_sq - mean * mean
    s = gamma * jax.lax.rsqrt(var + BN_EPS)
    t = beta - mean * s
    return x * s + t


def mlp_kernel(x_ref,
               w1_ref, b1_ref, g1_ref, be1_ref,
               w2_ref, b2_ref, g2_ref, be2_ref,
               w3_ref, b3_ref,
               o_ref):
    x = x_ref[...]

    # layer_1 + LeakyReLU + BatchNorm1d(64)   (Dropout = identity)
    h = _dot_bf16(x, w1_ref[...]) + b1_ref[...]
    h = _leaky_relu(h)
    h = _bn_train_fused(h, g1_ref[...], be1_ref[...])

    # layer_2 + LeakyReLU + BatchNorm1d(32)   (Dropout = identity)
    h = _dot_bf16(h, w2_ref[...]) + b2_ref[...]
    h = _leaky_relu(h)
    h = _bn_train_fused(h, g2_ref[...], be2_ref[...])

    # layer_out: (B,32)@(32,1) -> VPU multiply + lane reduce instead of MXU
    out = jnp.sum(h * w3_ref[...], axis=-1, keepdims=True) + b3_ref[...]
    o_ref[...] = out.astype(o_ref.dtype)


def _full_spec(shape):
    # whole array as a single VMEM block (no grid)
    return pl.BlockSpec(shape, lambda: tuple(0 for _ in shape))


def binary_classification_forward(x, params):
    (w1, b1, g1, be1, w2, b2, g2, be2, w3, b3) = params
    B = x.shape[0]
    in_dim = w1.shape[0]

    # bf16 weights for the two MXU matmuls; final layer kept f32 as a [1,32] row.
    w1b = w1.astype(jnp.bfloat16)
    w2b = w2.astype(jnp.bfloat16)
    w3_row = w3.reshape(1, -1)

    operands = (x, w1b, b1, g1, be1, w2b, b2, g2, be2, w3_row, b3)

    in_bytes = sum(int(op.size) * op.dtype.itemsize for op in operands)
    out_bytes = B * 1 * 4
    cost = pl.CostEstimate(
        flops=int(2 * B * (in_dim * 64 + 64 * 32 + 32)),
        transcendentals=0,
        bytes_accessed=int(in_bytes + out_bytes),
    )
    # Tiny resident set; size the scoped-VMEM request explicitly (headroom for
    # double-buffering + (8,128) layout padding of the small tiles).
    vmem_limit = max(4 << 20, 4 * (in_bytes + out_bytes) + (1 << 19))

    return pl.pallas_call(
        mlp_kernel,
        out_shape=jax.ShapeDtypeStruct((B, 1), jnp.float32),
        in_specs=[_full_spec(op.shape) for op in operands],
        out_specs=_full_spec((B, 1)),
        compiler_params=pltpu.CompilerParams(vmem_limit_bytes=int(vmem_limit)),
        cost_estimate=cost,
    )(*operands)


def init_params(key, input_dimension):
    """Deterministic parameter init matching the PyTorch module's shapes."""
    ks = jax.random.split(key, 6)

    def linear(kw, kb, fan_in, fan_out):
        bound = 1.0 / jnp.sqrt(fan_in)
        w = jax.random.uniform(kw, (fan_in, fan_out), jnp.float32, -bound, bound)
        b = jax.random.uniform(kb, (1, fan_out), jnp.float32, -bound, bound)
        return w, b

    w1, b1 = linear(ks[0], ks[1], input_dimension, 64)
    w2, b2 = linear(ks[2], ks[3], 64, 32)
    w3, b3 = linear(ks[4], ks[5], 32, 1)
    # BatchNorm1d affine params (PyTorch init: weight=1, bias=0)
    g1, be1 = jnp.ones((1, 64), jnp.float32), jnp.zeros((1, 64), jnp.float32)
    g2, be2 = jnp.ones((1, 32), jnp.float32), jnp.zeros((1, 32), jnp.float32)
    return (w1, b1, g1, be1, w2, b2, g2, be2, w3, b3)


def reference_forward(x, params):
    """Pure-JAX reference using the same bf16-MXU / fused-BN recipe."""
    (w1, b1, g1, be1, w2, b2, g2, be2, w3, b3) = params
    h = _dot_bf16(x, w1.astype(jnp.bfloat16)) + b1
    h = _bn_train_fused(_leaky_relu(h), g1, be1)
    h = _dot_bf16(h, w2.astype(jnp.bfloat16)) + b2
    h = _bn_train_fused(_leaky_relu(h), g2, be2)
    return jnp.sum(h * w3.reshape(1, -1), axis=-1, keepdims=True) + b3


if __name__ == "__main__":
    key = jax.random.PRNGKey(0)
    k_x, k_p = jax.random.split(key)

    B, INPUT_DIM = 32, 16
    x = jax.random.normal(k_x, (B, INPUT_DIM), jnp.float32)
    params = init_params(k_p, INPUT_DIM)

    out = jax.block_until_ready(binary_classification_forward(x, params))
    ref = reference_forward(x, params)

    assert out.shape == (B, 1)
    assert jnp.allclose(out, ref, atol=1e-3, rtol=1e-3), "mismatch vs JAX reference"

    print("KERNEL_OK")
</pallas_src>

<mosaic_0001>
module attributes {stable_mosaic.version = 11 : i64} {
  func.func @mlp_kernel(%arg0: memref<32x16xf32, #tpu.memory_space<vmem>>, %arg1: memref<16x64xbf16, #tpu.memory_space<vmem>>, %arg2: memref<1x64xf32, #tpu.memory_space<vmem>>, %arg3: memref<1x64xf32, #tpu.memory_space<vmem>>, %arg4: memref<1x64xf32, #tpu.memory_space<vmem>>, %arg5: memref<64x32xbf16, #tpu.memory_space<vmem>>, %arg6: memref<1x32xf32, #tpu.memory_space<vmem>>, %arg7: memref<1x32xf32, #tpu.memory_space<vmem>>, %arg8: memref<1x32xf32, #tpu.memory_space<vmem>>, %arg9: memref<1x32xf32, #tpu.memory_space<vmem>>, %arg10: memref<1x1xf32, #tpu.memory_space<vmem>>, %arg11: memref<32x1xf32, #tpu.memory_space<vmem>>) attributes {dimension_semantics = [], scalar_prefetch = 0 : i64, scratch_operands = 0 : i64, tpu.core_type = #tpu.core_type<tc>} {
    %c0 = arith.constant 0 : index
    %c0_0 = arith.constant 0 : index
    %0 = vector.load %arg0[%c0, %c0_0] : memref<32x16xf32, #tpu.memory_space<vmem>>, vector<32x16xf32>
    %c0_1 = arith.constant 0 : index
    %c0_2 = arith.constant 0 : index
    %1 = vector.load %arg1[%c0_1, %c0_2] : memref<16x64xbf16, #tpu.memory_space<vmem>>, vector<16x64xbf16>
    %2 = arith.truncf %0 : vector<32x16xf32> to vector<32x16xbf16>
    %cst = arith.constant dense<0.000000e+00> : vector<32x64xf32>
    %3 = tpu.matmul %2, %1, %cst {dimension_numbers = #tpu.dot_dimension_numbers<[1], [0], [0], [1], [0, 0, 1, 1], [], []>} : vector<32x16xbf16>, vector<16x64xbf16>, vector<32x64xf32> -> vector<32x64xf32>
    %c0_3 = arith.constant 0 : index
    %c0_4 = arith.constant 0 : index
    %4 = vector.load %arg2[%c0_3, %c0_4] : memref<1x64xf32, #tpu.memory_space<vmem>>, vector<1x64xf32>
    %5 = vector.broadcast %4 : vector<1x64xf32> to vector<32x64xf32>
    %6 = arith.addf %3, %5 : vector<32x64xf32>
    %cst_5 = arith.constant 0.000000e+00 : f32
    %7 = vector.broadcast %cst_5 : f32 to vector<32x64xf32>
    %8 = arith.cmpf ogt, %6, %7 : vector<32x64xf32>
    %cst_6 = arith.constant 0.00999999977 : f32
    %9 = vector.broadcast %cst_6 : f32 to vector<32x64xf32>
    %10 = arith.mulf %9, %6 : vector<32x64xf32>
    %11 = arith.select %8, %6, %10 : vector<32x64xi1>, vector<32x64xf32>
    %c0_7 = arith.constant 0 : index
    %c0_8 = arith.constant 0 : index
    %12 = vector.load %arg3[%c0_7, %c0_8] : memref<1x64xf32, #tpu.memory_space<vmem>>, vector<1x64xf32>
    %c0_9 = arith.constant 0 : index
    %c0_10 = arith.constant 0 : index
    %13 = vector.load %arg4[%c0_9, %c0_10] : memref<1x64xf32, #tpu.memory_space<vmem>>, vector<1x64xf32>
    %cst_11 = arith.constant dense<0.000000e+00> : vector<64xf32>
    %14 = vector.multi_reduction <add>, %11, %cst_11 [0] : vector<32x64xf32> to vector<64xf32>
    %15 = vector.shape_cast %14 : vector<64xf32> to vector<1x64xf32>
    %cst_12 = arith.constant 3.125000e-02 : f32
    %16 = vector.broadcast %cst_12 : f32 to vector<1x64xf32>
    %17 = arith.mulf %15, %16 : vector<1x64xf32>
    %18 = arith.mulf %11, %11 : vector<32x64xf32>
    %cst_13 = arith.constant dense<0.000000e+00> : vector<64xf32>
    %19 = vector.multi_reduction <add>, %18, %cst_13 [0] : vector<32x64xf32> to vector<64xf32>
    %20 = vector.shape_cast %19 : vector<64xf32> to vector<1x64xf32>
    %cst_14 = arith.constant 3.125000e-02 : f32
    %21 = vector.broadcast %cst_14 : f32 to vector<1x64xf32>
    %22 = arith.mulf %20, %21 : vector<1x64xf32>
    %23 = arith.mulf %17, %17 : vector<1x64xf32>
    %24 = arith.subf %22, %23 : vector<1x64xf32>
    %cst_15 = arith.constant 9.99999974E-6 : f32
    %25 = vector.broadcast %cst_15 : f32 to vector<1x64xf32>
    %26 = arith.addf %24, %25 : vector<1x64xf32>
    %27 = math.rsqrt %26 : vector<1x64xf32>
    %28 = arith.mulf %12, %27 : vector<1x64xf32>
    %29 = arith.mulf %17, %28 : vector<1x64xf32>
    %30 = arith.subf %13, %29 : vector<1x64xf32>
    %31 = vector.broadcast %28 : vector<1x64xf32> to vector<32x64xf32>
    %32 = arith.mulf %11, %31 : vector<32x64xf32>
    %33 = vector.broadcast %30 : vector<1x64xf32> to vector<32x64xf32>
    %34 = arith.addf %32, %33 : vector<32x64xf32>
    %c0_16 = arith.constant 0 : index
    %c0_17 = arith.constant 0 : index
    %35 = vector.load %arg5[%c0_16, %c0_17] : memref<64x32xbf16, #tpu.memory_space<vmem>>, vector<64x32xbf16>
    %36 = arith.truncf %34 : vector<32x64xf32> to vector<32x64xbf16>
    %cst_18 = arith.constant dense<0.000000e+00> : vector<32x32xf32>
    %37 = tpu.matmul %36, %35, %cst_18 {dimension_numbers = #tpu.dot_dimension_numbers<[1], [0], [0], [1], [0, 0, 1, 1], [], []>} : vector<32x64xbf16>, vector<64x32xbf16>, vector<32x32xf32> -> vector<32x32xf32>
    %c0_19 = arith.constant 0 : index
    %c0_20 = arith.constant 0 : index
    %38 = vector.load %arg6[%c0_19, %c0_20] : memref<1x32xf32, #tpu.memory_space<vmem>>, vector<1x32xf32>
    %39 = vector.broadcast %38 : vector<1x32xf32> to vector<32x32xf32>
    %40 = arith.addf %37, %39 : vector<32x32xf32>
    %cst_21 = arith.constant 0.000000e+00 : f32
    %41 = vector.broadcast %cst_21 : f32 to vector<32x32xf32>
    %42 = arith.cmpf ogt, %40, %41 : vector<32x32xf32>
    %cst_22 = arith.constant 0.00999999977 : f32
    %43 = vector.broadcast %cst_22 : f32 to vector<32x32xf32>
    %44 = arith.mulf %43, %40 : vector<32x32xf32>
    %45 = arith.select %42, %40, %44 : vector<32x32xi1>, vector<32x32xf32>
    %c0_23 = arith.constant 0 : index
    %c0_24 = arith.constant 0 : index
    %46 = vector.load %arg7[%c0_23, %c0_24] : memref<1x32xf32, #tpu.memory_space<vmem>>, vector<1x32xf32>
    %c0_25 = arith.constant 0 : index
    %c0_26 = arith.constant 0 : index
    %47 = vector.load %arg8[%c0_25, %c0_26] : memref<1x32xf32, #tpu.memory_space<vmem>>, vector<1x32xf32>
    %cst_27 = arith.constant dense<0.000000e+00> : vector<32xf32>
    %48 = vector.multi_reduction <add>, %45, %cst_27 [0] : vector<32x32xf32> to vector<32xf32>
    %49 = vector.shape_cast %48 : vector<32xf32> to vector<1x32xf32>
    %cst_28 = arith.constant 3.125000e-02 : f32
    %50 = vector.broadcast %cst_28 : f32 to vector<1x32xf32>
    %51 = arith.mulf %49, %50 : vector<1x32xf32>
    %52 = arith.mulf %45, %45 : vector<32x32xf32>
    %cst_29 = arith.constant dense<0.000000e+00> : vector<32xf32>
    %53 = vector.multi_reduction <add>, %52, %cst_29 [0] : vector<32x32xf32> to vector<32xf32>
    %54 = vector.shape_cast %53 : vector<32xf32> to vector<1x32xf32>
    %cst_30 = arith.constant 3.125000e-02 : f32
    %55 = vector.broadcast %cst_30 : f32 to vector<1x32xf32>
    %56 = arith.mulf %54, %55 : vector<1x32xf32>
    %57 = arith.mulf %51, %51 : vector<1x32xf32>
    %58 = arith.subf %56, %57 : vector<1x32xf32>
    %cst_31 = arith.constant 9.99999974E-6 : f32
    %59 = vector.broadcast %cst_31 : f32 to vector<1x32xf32>
    %60 = arith.addf %58, %59 : vector<1x32xf32>
    %61 = math.rsqrt %60 : vector<1x32xf32>
    %62 = arith.mulf %46, %61 : vector<1x32xf32>
    %63 = arith.mulf %51, %62 : vector<1x32xf32>
    %64 = arith.subf %47, %63 : vector<1x32xf32>
    %65 = vector.broadcast %62 : vector<1x32xf32> to vector<32x32xf32>
    %66 = arith.mulf %45, %65 : vector<32x32xf32>
    %67 = vector.broadcast %64 : vector<1x32xf32> to vector<32x32xf32>
    %68 = arith.addf %66, %67 : vector<32x32xf32>
    %c0_32 = arith.constant 0 : index
    %c0_33 = arith.constant 0 : index
    %69 = vector.load %arg9[%c0_32, %c0_33] : memref<1x32xf32, #tpu.memory_space<vmem>>, vector<1x32xf32>
    %70 = vector.broadcast %69 : vector<1x32xf32> to vector<32x32xf32>
    %71 = arith.mulf %68, %70 : vector<32x32xf32>
    %cst_34 = arith.constant dense<0.000000e+00> : vector<32xf32>
    %72 = vector.multi_reduction <add>, %71, %cst_34 [1] : vector<32x32xf32> to vector<32xf32>
    %73 = vector.shape_cast %72 : vector<32xf32> to vector<32x1xf32>
    %c0_35 = arith.constant 0 : index
    %c0_36 = arith.constant 0 : index
    %74 = vector.load %arg10[%c0_35, %c0_36] : memref<1x1xf32, #tpu.memory_space<vmem>>, vector<1x1xf32>
    %75 = vector.broadcast %74 : vector<1x1xf32> to vector<32x1xf32>
    %76 = arith.addf %73, %75 : vector<32x1xf32>
    %c0_37 = arith.constant 0 : index
    %c0_38 = arith.constant 0 : index
    %77 = vector.load %arg11[%c0_37, %c0_38] : memref<32x1xf32, #tpu.memory_space<vmem>>, vector<32x1xf32>
    tpu.vector_store %arg11[%c0_37, %c0_38], %76 {strides = array<i32>} : memref<32x1xf32, #tpu.memory_space<vmem>>, vector<32x1xf32>,
    return
  }
}

</mosaic_0001>

<bundles_post_ra>
// kernel: tpu_custom_call.1
= control target key start
LH: loop header
LB: loop body
LE: loop exit
PB: predicated region body
PF: predicated region fallthrough
CT: control target
= control target key end

     0   :  { %vm62_vm0 = vcmask 130048   ;;  %vm132_vm5 = vcmask 523264   ;;  %v173_v63 = vlaneseq  ;;  %vm302_vm10 = vcmask 261120   ;;  %s605_s1 = inlined_call_operand.vmem [shape: bf16[16,64], index: 1, kind: input, shape index: {}]   ;;  %s606_s0 = inlined_call_operand.vmem [shape: f32[32,16], index: 0, kind: input, shape index: {}]   ;;  %s607_s5 = inlined_call_operand.vmem [shape: bf16[64,32], index: 5, kind: input, shape index: {}]   ;;  %s608_s2 = inlined_call_operand.vmem [shape: f32[1,64], index: 2, kind: input, shape index: {}]   ;;  %s609_s3 = inlined_call_operand.vmem [shape: f32[1,64], index: 3, kind: input, shape index: {}]   ;;  %s610_s4 = inlined_call_operand.vmem [shape: f32[1,64], index: 4, kind: input, shape index: {}]   ;;  %s611_s10 = inlined_call_operand.<no memory space> [shape: f32[1,1], index: 10, kind: input, shape index: {}]   ;;  %s612_s6 = inlined_call_operand.vmem [shape: f32[1,32], index: 6, kind: input, shape index: {}]   ;;  %s613_s7 = inlined_call_operand.vmem [shape: f32[1,32], index: 7, kind: input, shape index: {}]   ;;  %s614_s8 = inlined_call_operand.vmem [shape: f32[1,32], index: 8, kind: input, shape index: {}]   ;;  %s615_s9 = inlined_call_operand.vmem [shape: f32[1,32], index: 9, kind: input, shape index: {}]   ;;  %s616_s11 = inlined_call_operand.vmem [shape: f32[32,1], index: 11, kind: output, shape index: {}]  }
   0x1   :  { %v445_v0 = vld [vmem:[%s605_s1] sm:$0xff]   ;;  %v42_v2 = vld [vmem:[%s606_s0 + $0x8] sm:$0xff]  ;;  %v43_v3 = vld [vmem:[%s606_s0 + $0x10] sm:$0xff]  ;;  %vm396_vm11 = vcmask 7168  }
   0x2   :  { %v41_v1 = vld [vmem:[%s606_s0] sm:$0xff]  ;;  %427 = vmatprep.subr.bf16.mxu0 %v445_v0  ;;  %v44_v5 = vld [vmem:[%s606_s0 + $0x18] sm:$0xff]  ;;  %v447_v8 = vld [vmem:[%s607_s5 + $0x8] sm:$0xff]  }
   0x3   :  { %v47_v4 = vpack.c.bf16 %v42_v2, %v41_v1  ;;  %428 = vmatpush3.bf16.msra.mxu0 %v445_v0  ;;  %v48_v6 = vpack.c.bf16 %v44_v5, %v43_v3  ;;  %v446_v7 = vld [vmem:[%s607_s5] sm:$0xff]   ;;  %v448_v9 = vld [vmem:[%s607_s5 + $0x10] sm:$0xff]   ;;  %v449_v10 = vld [vmem:[%s607_s5 + $0x18] sm:$0xff]   ;;  %v174_v0 = vshrl.u32 %v173_v63, 7 }
   0x4   :  { %433 = vmatprep.subr.bf16.mxu1 %v446_v7  ;;  %v405_v11 = vld [vmem:[%s608_s2] ss:$0 sm:$0xff] }
   0x5   :  { %429 = vmatprep.mubr.msk.bf16.mxu0 %vm62_vm0, %v47_v4  ;;  %434 = vmatpush3.bf16.msra.mxu1 %v446_v7  ;;  %v130_v1 = vld [vmem:[%s609_s3] sm:$0x1]  ;;  %v555_v2 = vsub.s32 0, %v174_v0 }
   0x6   :  { %430 = vmatmul.mubr.msk.bf16.vlgmr.msra.gmra.mrb[0].mxu0 %vm62_vm0, %v48_v6  ;;  %435 = vmatprep.subr.bf16.mxu1 %v447_v8  ;;  %v131_v5 = vld [vmem:[%s610_s4] sm:$0x1] }
   0x9   :  { %436 = vmatpush3.bf16.msra.mxu1 %v447_v8 }
   0xa   :  { %437 = vmatprep.subr.bf16.mxu1 %v448_v9 }
   0xd   :  { %438 = vmatpush3.bf16.msra.mxu1 %v448_v9 }
   0xe   :  { %439 = vmatprep.subr.bf16.mxu1 %v449_v10 }
  0x11   :  { %440 = vmatpush3.bf16.msra.mxu1 %v449_v10 }
  0xd9   :  { %v431_v12 = vpop.f32.mrb[0].mxu0 }
  0xda   :  { %v112_v13 = vadd.f32 %v431_v12, %v405_v11  ;;  %v103_v14 = vpop.f32.mrb[1].mxu0 }
  0xdb   :  { %v104_v15 = vadd.f32 %v405_v11, %v103_v14  ;;  %v432_v16 = vpop.f32.mrb[2].mxu0 }
  0xdc   :  { %v124_v17 = vmul.f32 0.01, %v112_v13  ;;  %v115_v18 = vadd.f32 %v432_v16, %v405_v11  ;;  %v106_v19 = vpop.f32.mrb[3].mxu0  ;;  %vm120_vm1 = vcmp.gt.f32.partialorder %v112_v13, 0.0 }
  0xdd   :  { %vm118_vm2 = vcmp.gt.f32.partialorder %v104_v15, 0.0  ;;  %v122_v20 = vmul.f32 0.01, %v104_v15  ;;  %v107_v21 = vadd.f32 %v405_v11, %v106_v19 }
  0xde   :  { %v125_v22 = vmul.f32 0.01, %v115_v18  ;;  %vm121_vm3 = vcmp.gt.f32.partialorder %v115_v18, 0.0  ;;  %v128_v24 = vsel %vm120_vm1, %v112_v13, %v124_v17 }
  0xdf   :  { %v126_v23 = vsel %vm118_vm2, %v104_v15, %v122_v20  ;;  %vm119_vm4 = vcmp.gt.f32.partialorder %v107_v21, 0.0  ;;  %v123_v25 = vmul.f32 0.01, %v107_v21  ;;  %v149_v29 = vmul.f32 %v128_v24, %v128_v24 }
  0xe0   :  { %v147_v26 = vmul.f32 %v126_v23, %v126_v23  ;;  %v129_v27 = vsel %vm121_vm3, %v115_v18, %v125_v22  ;;  %v133_v30 = vsel %vm132_vm5, %v126_v23, 0.0  ;;  %v136_v34 = vsel %vm132_vm5, %v128_v24, 0.0 }
  0xe1   :  { %v127_v28 = vsel %vm119_vm4, %v107_v21, %v123_v25  ;;  %v150_v36 = vmul.f32 %v129_v27, %v129_v27  ;;  %v154_v40 = vsel %vm132_vm5, %v149_v29, 0.0  ;;  %v138_v41 = vsel %vm132_vm5, %v129_v27, 0.0  ;;  %v409_v21 = vld [vmem:[%s612_s6] ss:$0 sm:$0xff] }
  0xe2   :  { %v134_v31 = vsel %vm132_vm5, %v127_v28, 0.0  ;;  %v148_v32 = vmul.f32 %v127_v28, %v127_v28  ;;  %v151_v35 = vsel %vm132_vm5, %v147_v26, 0.0  ;;  %v16_v20 = vstv %s611_s10 }
  0xe3   :  { %v135_v33 = vadd.f32 %v134_v31, %v133_v30  ;;  %v156_v44 = vsel %vm132_vm5, %v150_v36, 0.0  ;;  %17 = vst [vmem:[#allocation2] sm:$0x1] %v16_v20 }
  0xe4   :  { %v152_v37 = vsel %vm132_vm5, %v148_v32, 0.0 }
  0xe5   :  { %v137_v38 = vadd.f32 %v136_v34, %v135_v33  ;;  %v153_v39 = vadd.f32 %v152_v37, %v151_v35 }
  0xe7   :  { %v139_v42 = vadd.f32 %v138_v41, %v137_v38  ;;  %v155_v43 = vadd.f32 %v154_v40, %v153_v39 }
  0xe9   :  { %v140_v45 = vrot.slane %v139_v42, 4  ;;  %v157_v46 = vadd.f32 %v156_v44, %v155_v43 }
  0xeb   :  { %v141_v47 = vadd.f32 %v140_v45, %v139_v42  ;;  %v158_v48 = vrot.slane %v157_v46, 4 }
  0xed   :  { %v142_v49 = vrot.slane %v141_v47, 2  ;;  %v159_v50 = vadd.f32 %v158_v48, %v157_v46 }
  0xef   :  { %v143_v51 = vadd.f32 %v142_v49, %v141_v47  ;;  %v160_v52 = vrot.slane %v159_v50, 2 }
  0xf1   :  { %v144_v53 = vrot.slane %v143_v51, 1  ;;  %v161_v54 = vadd.f32 %v160_v52, %v159_v50 }
  0xf3   :  { %v162_v55 = vrot.slane %v161_v54, 1  ;;  %v145_v56 = vadd.f32 %v144_v53, %v143_v51 }
  0xf5   :  { %v163_v57 = vadd.f32 %v162_v55, %v161_v54  ;;  %v146_v58 = vmul.f32 0.03125, %v145_v56 }
  0xf7   :  { %v164_v59 = vmul.f32 0.03125, %v163_v57  ;;  %v165_v60 = vmul.f32 %v146_v58, %v146_v58 }
  0xf9   :  { %v166_v61 = vsub.f32 %v164_v59, %v165_v60 }
  0xfb   :  { %v167_v62 = vadd.f32 1e-05, %v166_v61 }
  0xfd   :  { %450 = vrsqrt.f32 %v167_v62 }
 0x107   :  { %v451_v3 = vpop.eup %450 }
 0x108   :  { %v169_v4 = vmul.f32 %v451_v3, %v130_v1 }
 0x10a   :  { %v170_v6 = vmul.f32 %v169_v4, %v146_v58  ;;  %v176_v7 = vrot.slane %v169_v4, %v555_v2 }
 0x10c   :  { %v171_v8 = vsub.f32 %v131_v5, %v170_v6  ;;  %v178_v9 = vmul.f32 %v176_v7, %v126_v23  ;;  %v179_v10 = vmul.f32 %v176_v7, %v127_v28  ;;  %v180_v11 = vmul.f32 %v176_v7, %v128_v24 }
 0x10d   :  { %v181_v12 = vmul.f32 %v176_v7, %v129_v27 }
 0x10e   :  { %v186_v13 = vrot.slane %v171_v8, %v555_v2 }
 0x110   :  { %v188_v14 = vadd.f32 %v186_v13, %v178_v9  ;;  %v189_v15 = vadd.f32 %v186_v13, %v179_v10  ;;  %v190_v16 = vadd.f32 %v186_v13, %v180_v11  ;;  %v191_v17 = vadd.f32 %v186_v13, %v181_v12  ;;  %v300_v10 = vld [vmem:[%s613_s7] sm:$0x1] }
 0x111   :  { %v301_v13 = vld [vmem:[%s614_s8] sm:$0x1] }
 0x112   :  { %v200_v18 = vpack.c.bf16 %v189_v15, %v188_v14  ;;  %v201_v19 = vpack.c.bf16 %v191_v17, %v190_v16 }
 0x114   :  { %441 = vmatprep.mubr.msk.bf16.mxu1 %vm132_vm5, %v200_v18 }
 0x115   :  { %442 = vmatmul.mubr.msk.bf16.vlgmr.msra.gmra.mrb[0].mxu1 %vm132_vm5, %v201_v19 }
 0x1e8   :  { %v443_v22 = vpop.f32.mrb[0].mxu1 }
 0x1e9   :  { %v282_v23 = vadd.f32 %v443_v22, %v409_v21  ;;  %v273_v24 = vpop.f32.mrb[1].mxu1  ;;  %v416_v22 = vld [vmem:[%s615_s9] ss:$0 sm:$0xff] }
 0x1ea   :  { %v274_v25 = vadd.f32 %v409_v21, %v273_v24  ;;  %v444_v26 = vpop.f32.mrb[2].mxu1 }
 0x1eb   :  { %v294_v27 = vmul.f32 0.01, %v282_v23  ;;  %v285_v28 = vadd.f32 %v444_v26, %v409_v21  ;;  %v276_v29 = vpop.f32.mrb[3].mxu1  ;;  %vm290_vm6 = vcmp.gt.f32.partialorder %v282_v23, 0.0 }
 0x1ec   :  { %vm288_vm7 = vcmp.gt.f32.partialorder %v274_v25, 0.0  ;;  %v292_v30 = vmul.f32 0.01, %v274_v25  ;;  %v277_v31 = vadd.f32 %v409_v21, %v276_v29 }
 0x1ed   :  { %v295_v32 = vmul.f32 0.01, %v285_v28  ;;  %vm291_vm8 = vcmp.gt.f32.partialorder %v285_v28, 0.0  ;;  %v298_v34 = vsel %vm290_vm6, %v282_v23, %v294_v27 }
 0x1ee   :  { %v296_v33 = vsel %vm288_vm7, %v274_v25, %v292_v30  ;;  %vm289_vm9 = vcmp.gt.f32.partialorder %v277_v31, 0.0  ;;  %v293_v35 = vmul.f32 0.01, %v277_v31  ;;  %v319_v39 = vmul.f32 %v298_v34, %v298_v34 }
 0x1ef   :  { %v317_v36 = vmul.f32 %v296_v33, %v296_v33  ;;  %v299_v37 = vsel %vm291_vm8, %v285_v28, %v295_v32  ;;  %v303_v40 = vsel %vm302_vm10, %v296_v33, 0.0  ;;  %v306_v44 = vsel %vm302_vm10, %v298_v34, 0.0 }
 0x1f0   :  { %v297_v38 = vsel %vm289_vm9, %v277_v31, %v293_v35  ;;  %v320_v46 = vmul.f32 %v299_v37, %v299_v37  ;;  %v324_v50 = vsel %vm302_vm10, %v319_v39, 0.0  ;;  %v308_v51 = vsel %vm302_vm10, %v299_v37, 0.0 }
 0x1f1   :  { %v304_v41 = vsel %vm302_vm10, %v297_v38, 0.0  ;;  %v318_v42 = vmul.f32 %v297_v38, %v297_v38  ;;  %v321_v45 = vsel %vm302_vm10, %v317_v36, 0.0 }
 0x1f2   :  { %v305_v43 = vadd.f32 %v304_v41, %v303_v40  ;;  %v326_v54 = vsel %vm302_vm10, %v320_v46, 0.0 }
 0x1f3   :  { %v322_v47 = vsel %vm302_vm10, %v318_v42, 0.0 }
 0x1f4   :  { %v307_v48 = vadd.f32 %v306_v44, %v305_v43  ;;  %v323_v49 = vadd.f32 %v322_v47, %v321_v45 }
 0x1f6   :  { %v309_v52 = vadd.f32 %v308_v51, %v307_v48  ;;  %v325_v53 = vadd.f32 %v324_v50, %v323_v49 }
 0x1f8   :  { %v310_v55 = vrot.slane %v309_v52, 4  ;;  %v327_v56 = vadd.f32 %v326_v54, %v325_v53 }
 0x1fa   :  { %v311_v57 = vadd.f32 %v310_v55, %v309_v52  ;;  %v328_v58 = vrot.slane %v327_v56, 4 }
 0x1fc   :  { %v312_v59 = vrot.slane %v311_v57, 2  ;;  %v329_v60 = vadd.f32 %v328_v58, %v327_v56 }
 0x1fe   :  { %v313_v61 = vadd.f32 %v312_v59, %v311_v57  ;;  %v330_v62 = vrot.slane %v329_v60, 2 }
 0x200   :  { %v314_v63 = vrot.slane %v313_v61, 1  ;;  %v331_v0 = vadd.f32 %v330_v62, %v329_v60 }
 0x202   :  { %v332_v1 = vrot.slane %v331_v0, 1  ;;  %v315_v3 = vadd.f32 %v314_v63, %v313_v61 }
 0x204   :  { %v333_v4 = vadd.f32 %v332_v1, %v331_v0  ;;  %v316_v5 = vmul.f32 0.03125, %v315_v3 }
 0x206   :  { %v334_v6 = vmul.f32 0.03125, %v333_v4  ;;  %v335_v7 = vmul.f32 %v316_v5, %v316_v5 }
 0x208   :  { %v336_v8 = vsub.f32 %v334_v6, %v335_v7 }
 0x20a   :  { %v337_v9 = vadd.f32 1e-05, %v336_v8 }
 0x20c   :  { %452 = vrsqrt.f32 %v337_v9 }
 0x216   :  { %v453_v11 = vpop.eup %452 }
 0x217   :  { %v339_v12 = vmul.f32 %v453_v11, %v300_v10 }
 0x219   :  { %v340_v14 = vmul.f32 %v339_v12, %v316_v5  ;;  %v346_v15 = vrot.slane %v339_v12, %v555_v2 }
 0x21b   :  { %v341_v16 = vsub.f32 %v301_v13, %v340_v14  ;;  %v350_v17 = vmul.f32 %v346_v15, %v298_v34  ;;  %v348_v18 = vmul.f32 %v346_v15, %v296_v33  ;;  %v351_v19 = vmul.f32 %v346_v15, %v299_v37  ;;  %v417_v34 = vld [vmem:[#allocation2] ss:$0 sm:$0xff] }
 0x21c   :  { %v349_v20 = vmul.f32 %v346_v15, %v297_v38 }
 0x21d   :  { %v356_v21 = vrot.slane %v341_v16, %v555_v2 }
 0x21f   :  { %v360_v23 = vadd.f32 %v356_v21, %v350_v17  ;;  %v358_v24 = vadd.f32 %v356_v21, %v348_v18  ;;  %v361_v25 = vadd.f32 %v356_v21, %v351_v19  ;;  %v359_v26 = vadd.f32 %v356_v21, %v349_v20 }
 0x221   :  { %v371_v27 = vmul.f32 %v416_v22, %v360_v23  ;;  %v369_v28 = vmul.f32 %v416_v22, %v358_v24  ;;  %v372_v31 = vmul.f32 %v416_v22, %v361_v25  ;;  %v370_v32 = vmul.f32 %v416_v22, %v359_v26 }
 0x223   :  { %v379_v29 = vsel %vm302_vm10, %v371_v27, 0.0  ;;  %v373_v30 = vsel %vm302_vm10, %v369_v28, 0.0  ;;  %v382_v2 = vsel %vm302_vm10, %v372_v31, 0.0  ;;  %v376_v33 = vsel %vm302_vm10, %v370_v32, 0.0 }
 0x224   :  { %380 = vadd.xlane.f32.xlu1 %v379_v29  ;;  %374 = vadd.xlane.f32.xlu0 %v373_v30 }
 0x228   :  { %383 = vadd.xlane.f32.xlu1 %v382_v2  ;;  %377 = vadd.xlane.f32.xlu0 %v376_v33 }
 0x2b1   :  { %v381_v35 = vpop.xlane.xlu1 %380  ;;  %v375_v36 = vpop.xlane.xlu0 %374 }
 0x2b2   :  { %v394_v37 = vadd.f32 %v417_v34, %v381_v35  ;;  %v392_v38 = vadd.f32 %v417_v34, %v375_v36 }
 0x2b4   :  { %399 = vst.msk [vmem:[%s616_s11 + $0x10] sm:$0xff] %vm396_vm11, %v394_v37  ;;  %397 = vst.msk [vmem:[%s616_s11] sm:$0xff] %vm396_vm11, %v392_v38 }
 0x2b5   :  { %v384_v39 = vpop.xlane.xlu1 %383  ;;  %v378_v40 = vpop.xlane.xlu0 %377 }
 0x2b6   :  { %v395_v41 = vadd.f32 %v417_v34, %v384_v39  ;;  %v393_v42 = vadd.f32 %v417_v34, %v378_v40 }
 0x2b8   :  { %400 = vst.msk [vmem:[%s616_s11 + $0x18] sm:$0xff] %vm396_vm11, %v395_v41  ;;  %398 = vst.msk [vmem:[%s616_s11 + $0x8] sm:$0xff] %vm396_vm11, %v393_v42 }

</bundles_post_ra>
